<compile_context>
chip_gen: v7x
topology: tpu7x:2x2x1
jax: 0.10.0
libtpu: 0.0.40
codegen_flags: <defaults>
</compile_context>

<pallas_src>
import jax
import jax.numpy as jnp
import numpy as np
from jax.experimental import pallas as pl
from jax.experimental.pallas import tpu as pltpu

BN_EPS = 1e-5


def _conv1x1_bn_kernel(x_ref, w_ref, b_ref, o_ref):
    # x_ref: (Cin, TL) f32   -- spatial on lanes, channels on sublanes
    # w_ref: (Cout, Cin) bf16 (BN scale already folded in, in f32, pre-cast)
    # b_ref: (Cout, 1) f32
    # o_ref: (Cout, TL) f32
    x_bf = x_ref[...].astype(jnp.bfloat16)          # in-kernel cast: no extra HBM pass
    y = jnp.dot(w_ref[...], x_bf, preferred_element_type=jnp.float32)
    o_ref[...] = (y + b_ref[...]).astype(o_ref.dtype)


def _choose_lane_tile(L, Cin, Cout, block_lanes, vmem_budget_bytes):
    """Pick a lane tile: full L if small, else a multiple of 128 that keeps the
    double-buffered (x-tile + out-tile) working set inside the VMEM budget."""
    if L <= block_lanes:
        return L
    tl = max(128, (block_lanes // 128) * 128)

    def working_set(t):
        # double-buffered input tile (f32) + output tile (f32)
        return 2 * (t * Cin * 4 + t * Cout * 4)

    while tl > 128 and working_set(tl) > vmem_budget_bytes:
        tl -= 128
    return tl


def conv1x1_bn(x_nchw, weight, scale, bias, *, stride=1, block_lanes=2048):
    """1x1 conv (no bias, stride s) + folded inference BatchNorm.

    x_nchw: (N, Cin, H, W) f32 (PyTorch NCHW layout)
    weight: (Cout, Cin, 1, 1) f32 (PyTorch layout)
    scale/bias: (Cout,) f32 folded BN params
    Returns (N, Cout, Ho, Wo) f32.
    """
    N, Cin, H, W = x_nchw.shape
    Cout = weight.shape[0]

    # Stride on a 1x1 conv == exact spatial subsampling (no padding).
    if stride != 1:
        x_nchw = x_nchw[:, :, ::stride, ::stride]
    Ho, Wo = x_nchw.shape[2], x_nchw.shape[3]
    L = Ho * Wo

    # Free (contiguous) reshape: spatial folded onto the lane axis.
    x3d = x_nchw.reshape(N, Cin, L)

    # Fold BN scale into the weight in f32, THEN cast to bf16 for the MXU.
    w2 = weight[:, :, 0, 0].astype(jnp.float32)                 # (Cout, Cin)
    w_folded = (w2 * scale.astype(jnp.float32)[:, None]).astype(jnp.bfloat16)
    b2 = bias.reshape(Cout, 1).astype(jnp.float32)

    # Lane tile: large, 128-aligned, and sized for a conservative VMEM budget
    # that fits every generation (v7x: 64 MiB physical, ~32 MiB scoped).
    vmem_budget = 24 * 1024 * 1024
    tl = _choose_lane_tile(L, Cin, Cout, block_lanes, vmem_budget)
    grid = (N, pl.cdiv(L, tl))

    grid_spec = pltpu.PrefetchScalarGridSpec(
        num_scalar_prefetch=0,
        grid=grid,
        in_specs=[
            # x tile: (Cin, tl); batch dim squeezed out.
            pl.BlockSpec((None, Cin, tl), lambda n, l: (n, 0, l)),
            # Folded weight: fully resident (tiny for typical 1x1 channels).
            pl.BlockSpec((Cout, Cin), lambda n, l: (0, 0)),
            # BN bias.
            pl.BlockSpec((Cout, 1), lambda n, l: (0, 0)),
        ],
        # Lane-dense output tile: last dim is the spatial axis.
        out_specs=pl.BlockSpec((None, Cout, tl), lambda n, l: (n, 0, l)),
    )

    out3d = pl.pallas_call(
        _conv1x1_bn_kernel,
        out_shape=jax.ShapeDtypeStruct((N, Cout, L), jnp.float32),
        grid_spec=grid_spec,
        compiler_params=pltpu.CompilerParams(
            dimension_semantics=("parallel", "parallel"),
            vmem_limit_bytes=32 * 1024 * 1024,
        ),
    )(x3d, w_folded, b2)

    # Free reshape back to NCHW — no transpose needed in this orientation.
    return out3d.reshape(N, Cout, Ho, Wo)


def _fold_bn(gamma, beta, mean, var):
    scale = gamma / jnp.sqrt(var + BN_EPS)
    bias = beta - mean * scale
    return scale, bias


def make_params(key, in_channels, out_channels):
    """Deterministic synthetic parameters matching the PyTorch module shapes."""
    kw, kg, kb, km, kv = jax.random.split(key, 5)
    weight = jax.random.normal(kw, (out_channels, in_channels, 1, 1), jnp.float32) * 0.1
    gamma = jax.random.normal(kg, (out_channels,), jnp.float32) * 0.1 + 1.0
    beta = jax.random.normal(kb, (out_channels,), jnp.float32) * 0.1
    mean = jax.random.normal(km, (out_channels,), jnp.float32) * 0.1
    var = jax.random.uniform(kv, (out_channels,), jnp.float32, 0.5, 1.5)
    scale, bias = _fold_bn(gamma, beta, mean, var)
    return weight, scale, bias


def reference(x_nchw, weight, scale, bias, *, stride=1):
    """Pure-JAX f32 reference: 1x1 conv (stride s, no bias) + folded BN."""
    xs = x_nchw[:, :, ::stride, ::stride] if stride != 1 else x_nchw
    w2 = weight[:, :, 0, 0]                                   # (Cout, Cin)
    y = jnp.einsum("oc,nchw->nohw", w2, xs)
    y = y * scale[None, :, None, None] + bias[None, :, None, None]
    return y


if __name__ == "__main__":
    # Conv1x1_BN(in_channels=4, out_channels=8)
    N, Cin, H, W = 2, 4, 16, 16
    Cout = 8

    key = jax.random.PRNGKey(0)
    kx, kp = jax.random.split(key)
    x = jax.random.normal(kx, (N, Cin, H, W), jnp.float32)   # PyTorch NCHW input
    weight, scale, bias = make_params(kp, Cin, Cout)

    # stride = 1
    out1 = jax.block_until_ready(conv1x1_bn(x, weight, scale, bias, stride=1))
    ref1 = reference(x, weight, scale, bias, stride=1)
    np.testing.assert_allclose(np.asarray(out1), np.asarray(ref1), rtol=2e-2, atol=2e-2)

    # stride = 2 (exercises the strided path of the module)
    out2 = jax.block_until_ready(conv1x1_bn(x, weight, scale, bias, stride=2))
    ref2 = reference(x, weight, scale, bias, stride=2)
    np.testing.assert_allclose(np.asarray(out2), np.asarray(ref2), rtol=2e-2, atol=2e-2)

    print("KERNEL_OK")
</pallas_src>

<mosaic_0001>
module attributes {stable_mosaic.version = 11 : i64} {
  func.func @_conv1x1_bn_kernel(%arg0: i32, %arg1: i32, %arg2: memref<1x4x256xf32, #tpu.memory_space<vmem>>, %arg3: memref<8x4xbf16, #tpu.memory_space<vmem>>, %arg4: memref<8x1xf32, #tpu.memory_space<vmem>>, %arg5: memref<1x8x256xf32, #tpu.memory_space<vmem>>) attributes {dimension_semantics = [#tpu.dimension_semantics<parallel>, #tpu.dimension_semantics<parallel>], iteration_bounds = array<i64: 2, 1>, scalar_prefetch = 0 : i64, scratch_operands = 0 : i64, tpu.core_type = #tpu.core_type<tc>, window_params = [{transform_indices = @transform_0, window_bounds = array<i64: 1, 4, 256>}, {pipeline_mode = #tpu.pipeline_mode<synchronous>, transform_indices = @transform_1, window_bounds = array<i64: 8, 4>}, {pipeline_mode = #tpu.pipeline_mode<synchronous>, transform_indices = @transform_2, window_bounds = array<i64: 8, 1>}, {transform_indices = @transform_3, window_bounds = array<i64: 1, 8, 256>}]} {
    %c0 = arith.constant 0 : index
    %c0_0 = arith.constant 0 : index
    %c0_1 = arith.constant 0 : index
    %0 = vector.load %arg2[%c0, %c0_0, %c0_1] : memref<1x4x256xf32, #tpu.memory_space<vmem>>, vector<1x4x256xf32>
    %1 = vector.shape_cast %0 : vector<1x4x256xf32> to vector<4x256xf32>
    %2 = arith.truncf %1 : vector<4x256xf32> to vector<4x256xbf16>
    %c0_2 = arith.constant 0 : index
    %c0_3 = arith.constant 0 : index
    %3 = vector.load %arg3[%c0_2, %c0_3] : memref<8x4xbf16, #tpu.memory_space<vmem>>, vector<8x4xbf16>
    %cst = arith.constant dense<0.000000e+00> : vector<8x256xf32>
    %4 = tpu.matmul %3, %2, %cst {dimension_numbers = #tpu.dot_dimension_numbers<[1], [0], [0], [1], [0, 0, 1, 1], [], []>} : vector<8x4xbf16>, vector<4x256xbf16>, vector<8x256xf32> -> vector<8x256xf32>
    %c0_4 = arith.constant 0 : index
    %c0_5 = arith.constant 0 : index
    %5 = vector.load %arg4[%c0_4, %c0_5] : memref<8x1xf32, #tpu.memory_space<vmem>>, vector<8x1xf32>
    %6 = vector.broadcast %5 : vector<8x1xf32> to vector<8x256xf32>
    %7 = arith.addf %4, %6 : vector<8x256xf32>
    %c0_6 = arith.constant 0 : index
    %c0_7 = arith.constant 0 : index
    %c0_8 = arith.constant 0 : index
    %8 = vector.load %arg5[%c0_6, %c0_7, %c0_8] : memref<1x8x256xf32, #tpu.memory_space<vmem>>, vector<1x8x256xf32>
    %9 = vector.shape_cast %8 : vector<1x8x256xf32> to vector<8x256xf32>
    %10 = vector.shape_cast %7 : vector<8x256xf32> to vector<1x8x256xf32>
    tpu.vector_store %arg5[%c0_6, %c0_7, %c0_8], %10 {strides = array<i32>} : memref<1x8x256xf32, #tpu.memory_space<vmem>>, vector<1x8x256xf32>,
    return
  }
  func.func @transform_0(%arg0: i32, %arg1: i32) -> (i32, i32, i32) {
    %c0_i32 = arith.constant 0 : i32
    %c0_i32_0 = arith.constant 0 : i32
    return %arg0, %c0_i32, %arg1 : i32, i32, i32
  }
  func.func @transform_1(%arg0: i32, %arg1: i32) -> (i32, i32) {
    %c0_i32 = arith.constant 0 : i32
    %c0_i32_0 = arith.constant 0 : i32
    %c0_i32_1 = arith.constant 0 : i32
    return %c0_i32, %c0_i32_0 : i32, i32
  }
  func.func @transform_2(%arg0: i32, %arg1: i32) -> (i32, i32) {
    %c0_i32 = arith.constant 0 : i32
    %c0_i32_0 = arith.constant 0 : i32
    %c0_i32_1 = arith.constant 0 : i32
    return %c0_i32, %c0_i32_0 : i32, i32
  }
  func.func @transform_3(%arg0: i32, %arg1: i32) -> (i32, i32, i32) {
    %c0_i32 = arith.constant 0 : i32
    %c0_i32_0 = arith.constant 0 : i32
    return %arg0, %c0_i32, %arg1 : i32, i32, i32
  }
}

</mosaic_0001>

<bundles_post_ra>
// kernel: tpu_custom_call.1
= control target key start
LH: loop header
LB: loop body
LE: loop exit
PB: predicated region body
PF: predicated region fallthrough
CT: control target
= control target key end

     0   :  { %8 = vsyncpa [#allocation3], 0  ;;  %s776_s0 = inlined_call_operand.hbm [shape: f32[2,4,256], index: 0, kind: input, shape index: {}]   ;;  %s777_s1 = inlined_call_operand.vmem [shape: bf16[8,4], index: 1, kind: input, shape index: {}]   ;;  %s778_s2 = inlined_call_operand.vmem [shape: f32[8,1], index: 2, kind: input, shape index: {}]   ;;  %s779_s3 = inlined_call_operand.hbm [shape: f32[2,8,256], index: 3, kind: output, shape index: {}]  }
   0x1   :  { %10 = vsyncpa [#allocation3 + $0x1], 0 }
   0x2   :  { %11 = vsyncpa [#allocation4], 0 }
   0x3   :  { %13 = vsyncpa [#allocation4 + $0x1], 0  ;;  %s597_s12 = smov 0   ;;  %s599_s13 = smov 0  }
   0x4   :  { %s601_s14 = smov 0   ;;  %s603_s15 = smov 0  }
   0x5   :  { %s605_s16 = smov 0   ;;  %s607_s17 = smov 0  }
   0x6 LB: > { %s376_s18 = sadd.s32 4294967295, %s572_s17   ;;  %s377_s19 = sadd.s32 4294967294, %s572_s17   ;;  %s572_s17 = sphi %s607_s17, %s19_s17   ;;  %s568_s16 = sphi %s605_s16, %s795_s16   ;;  %s564_s15 = sphi %s603_s15, %s794_s15   ;;  %s560_s14 = sphi %s601_s14, %s793_s14   ;;  %s556_s13 = sphi %s599_s13, %s792_s13   ;;  %s552_s12 = sphi %s597_s12, %s791_s12  }
   0x7   : > { %s31_s20 = sadd.s32 1, %s568_s16  ;;  %s40_s21 = sadd.s32 1, %s560_s14 }
   0x8   : > { %p33_p0 = scmp.ge.s32.totalorder %s31_s20, 2  ;;  %p47_p1 = scmp.ne.s32.totalorder %s560_s14, %s556_s13 }
   0x9   : > { %p48_p2 = scmp.eq.s32.totalorder %s572_s17, 0  ;;  %p53_p3 = scmp.ne.s32.totalorder %s556_s13, %s552_s12 }
   0xa   : > { %s797_s20 = smov (%p33_p0, %s31_s20), 0  ;;  %p54_p5 = scmp.eq.s32.totalorder %s376_s18, 0 }
   0xb   : > { %p638_p4 = por %p48_p2, %p47_p1  ;;  %s35_s23 = ssub.s32 %s568_s16, %s797_s20 }
   0xc   : > { %p121_p6 = scmp.eq.s32.totalorder %s376_s18, 1  ;;  %p38_p7 = scmp.eq.s32.totalorder %s35_s23, 0 }
   0xd   : > { %p644_p8 = por %p54_p5, %p53_p3  ;;  %p127_p10 = scmp.eq.s32.totalorder %s377_s19, 1 }
   0xe   : > { %p648_p9 = por %p121_p6, %p47_p1  ;;  %p407_p13 = scmp.lt.s32.totalorder %s572_s17, 2 }
   0xf   : > { %s653_s26 = scalar_select %p38_p7, %s560_s14, %s40_s21  }
  0x10   : > { %s783_s25 = scalar_select %p648_p9, 1, 0 }
  0x11   : > { %p655_p11 = por %p127_p10, %p53_p3  ;;  %s153_s28 = sand.u32 1, %s560_s14  }
  0x12   : > { %s380_s29 = sshll.u32 %s153_s28, 3  ;;  %s393_s30 = sshll.u32 %s568_s16, 7 }
  0x13   : > { %s784_s27 = scalar_select %p655_p11, 1, 0 }
  0x14   : > { %s666_s6 = scalar_lea.hbm %s776_s0, %s393_s30  ;;  %s157_s7 = scalar_lea.vmem [#allocation2], %s380_s29 }
  0x15   : > { %s167_s8 = sshll.u32 %s157_s7, 4  ;;  %p672_p0 = pnand %p407_p13, %p638_p4  ;;  %s668_s8 = int_to_ptr.vmem [resolvable:$true] %s167_s8 }
  0x16   : > { %s154_s10 = scalar_lea.sflag [#allocation3], %s153_s28  ;;  %s460_s11 = scalar_lea.hbm %s666_s6, 128 }
  0x17   : > { %p461_p3 = scmp.ne.s32.totalorder %s666_s6, %s460_s11  ;;  %p462_p5 = pneg %p672_p0 }
  0x18   : > { %s465_s21 = scalar_lea.hbm %s776_s0, 256  ;;  %p466_p4 = scmp.lt.u32.totalorder %s666_s6, %s776_s0 }
  0x19   : > { %p463_p6 = pnand %p462_p5, %p461_p3  ;;  %p467_p10 = scmp.lt.u32.totalorder %s465_s21, %s460_s11 }
  0x1a   : > { %p469_p12 = scmp.lt.u32.totalorder %s460_s11, %s666_s6 }
  0x1b   : > { %p464_p7 = pneg %p463_p6  ;;  %p468_p13 = por %p467_p10, %p466_p4 }
  0x1d   : > { %p470_p1 = por %p469_p12, %p468_p13 }
  0x1f   : > { %p471_p2 = pnand %p470_p1, %p464_p7 }
  0x21   : > { %474 = shalt.err (!%p471_p2)
}
  0x22   : > { %s475_s28 = scalar_lea.vmem %s668_s8, 128  ;;  %s574_s29 = smov [#allocation2]  }
  0x23   : > { %p476_p3 = scmp.ne.s32.totalorder %s668_s8, %s475_s28  ;;  %s480_s30 = sshll.u32 %s574_s29, 4  ;;  %s481_s30 = int_to_ptr.vmem [resolvable:$false] %s480_s30 }
  0x24   : > { %s482_s4 = scalar_lea.vmem %s481_s30, 256  ;;  %p483_p9 = scmp.lt.s32.totalorder %s668_s8, %s481_s30 }
  0x25   : > { %p478_p6 = pnand %p476_p3, %p462_p5  ;;  %p484_p4 = scmp.lt.s32.totalorder %s482_s4, %s475_s28 }
  0x27   : > { %p479_p11 = pneg %p478_p6  ;;  %p485_p10 = por %p484_p4, %p483_p9 }
  0x29   : > { %p486_p12 = pnand %p485_p10, %p479_p11 }
  0x2b   : > { %489 = shalt.err (!%p486_p12)
}
  0x2c   : > { %402 = dma.hbm_to_vmem [thread:$0]  (!%p672_p0), %s666_s6, 128, %s668_s8, %s154_s10  }
  0x2d   : > { %p786_p1 = scmp.lt.s32.totalorder %s572_s17, 3  ;;  %p787_p2 = scmp.ge.s32.totalorder %s572_s17, 1 }
  0x2f   : > { %p173_p5 = pnand %p787_p2, %p786_p1 }
  0x30   : > { %s708_s5 = sand.u32 (!%p173_p5), 1, %s556_s13  }
  0x31   : > { %176 = sbr.rel (%p173_p5) target bundleno = 295 (0x127), region = 32  ;;  %s384_s7 = sshll.u32 (!%p173_p5), %s708_s5, 3 }
  0x32   : > { %s179_s11 = scalar_lea.sflag (!%p173_p5), [#allocation3], %s708_s5  ;;  %s182_s18 = scalar_lea.vmem (!%p173_p5), [#allocation2], %s384_s7 }
  0x38   : > { %543 = dma.done.wait (%p644_p8), %s179_s11, 128  }
  0x39   : > { %545 = vsyncadd (%p644_p8), %s179_s11, 4294967168  ;;  %v575_v0 = vmov 0   ;;  %v208_v1 = vld [vmem:[%s182_s18] sm:$0xff]  ;;  %vm225_vm0 = vcmask 1041408   ;;  %vm221_vm1 = vcmask 31744   ;;  %s385_s10 = sshll.u32 %s708_s5, 4 }
  0x3a   : > { %264 = vmatprep.mubr.bf16.mxu0 %v575_v0  ;;  %458 = vset.pattern.permute.xlu0 %v575_v0  ;;  %v215_v2 = vld [vmem:[%s778_s2] sm:$0xff]  ;;  %v210_v3 = vcombine.high %v208_v1, %v208_v1  ;;  %v212_v4 = vpack.c.bf16 %v208_v1, %v208_v1  ;;  %s394_s19 = sshll.u32 %s564_s15, 8  ;;  %s204_s21 = scalar_lea.vmem [#allocation5], %s385_s10 }
  0x3b   : > { %218 = vperm.xlu0 %458, %v215_v2   ;;  %v214_v7 = vld [vmem:[%s777_s1] sm:$0xf]  ;;  %s292_s22 = sshll.u32 %s204_s21, 4  ;;  %s727_s29 = scalar_lea.hbm %s779_s3, %s394_s19  ;;  %s729_s22 = int_to_ptr.vmem [resolvable:$true] %s292_s22 }
  0x3c   : > { %v213_v5 = vpack.c.bf16 %v210_v3, %v210_v3  ;;  %v227_v6 = vsel %vm225_vm0, %v212_v4, 0  ;;  %s276_s15 = scalar_lea.sflag [#allocation4], %s708_s5  ;;  %s490_s30 = scalar_lea.vmem %s729_s22, 256 }
  0x3d   : > { %p491_p8 = scmp.ne.s32.totalorder %s729_s22, %s490_s30  ;;  %p788_p9 = scmp.ne.s32.totalorder %s783_s25, 0 }
  0x3e   : > { %386 = vmatprep.subr.msk.bf16.mxu0 %vm225_vm0, %v213_v5  ;;  %s576_s4 = smov [#allocation5]  }
  0x3f   : > { %233 = vmatpush1.bf16.msra.mxu0 %v227_v6  ;;  %p492_p11 = pnand %p491_p8, %p788_p9  ;;  %s494_s7 = sshll.u32 %s576_s4, 4  ;;  %s495_s7 = int_to_ptr.vmem [resolvable:$false] %s494_s7 }
  0x40   : > { %s496_s11 = scalar_lea.vmem %s495_s7, 512  ;;  %p497_p7 = scmp.lt.s32.totalorder %s729_s22, %s495_s7 }
  0x41   : > { %p493_p0 = pneg %p492_p11  ;;  %p498_p13 = scmp.lt.s32.totalorder %s496_s11, %s490_s30 }
  0x42   : > { %387 = vmatmul.mubr.msk.bf16.vlgmr.msra.gmra.mrb[0].mxu0 %vm221_vm1, %v214_v7 }
  0x43   : > { %p499_p3 = por %p498_p13, %p497_p7 }
  0x45   : > { %p500_p6 = pnand %p499_p3, %p493_p0 }
  0xba   : > { %v219_v8 = vpop.permute.xlu0 %218 }
 0x115   : > { %v266_v9 = vpop.f32.mrb[0].mxu0 }
 0x116   : > { %v267_v10 = vadd.f32 %v266_v9, %v219_v8  ;;  %v268_v11 = vpop.f32.mrb[1].mxu0 }
 0x117   : > { %v269_v12 = vadd.f32 %v268_v11, %v219_v8  ;;  %v270_v13 = vpop.f32.mrb[2].mxu0 }
 0x118   : > { %273 = vst [vmem:[%s204_s21] sm:$0xff] %v267_v10  ;;  %v271_v14 = vpop.f32.mrb[3].mxu0 }
 0x119   : > { %274 = vst [vmem:[%s204_s21 + $0x8] sm:$0xff] %v269_v12 }
 0x11a   : > { %503 = shalt.err (!%p500_p6)
}
 0x11b   : > { %s504_s5 = scalar_lea.hbm %s727_s29, 256  ;;  %s508_s8 = scalar_lea.hbm %s779_s3, 512 }
 0x11c   : > { %p505_p4 = scmp.ne.s32.totalorder %s727_s29, %s504_s5  ;;  %p509_p1 = scmp.lt.u32.totalorder %s727_s29, %s779_s3 }
 0x11d   : > { %p510_p2 = scmp.lt.u32.totalorder %s508_s8, %s504_s5  ;;  %p512_p8 = scmp.lt.u32.totalorder %s504_s5, %s727_s29 }
 0x11e   : > { %p506_p10 = pnand %p505_p4, %p788_p9 }
 0x11f   : > { %p511_p5 = por %p510_p2, %p509_p1 }
 0x120   : > { %p507_p12 = pneg %p506_p10 }
 0x121   : > { %p513_p11 = por %p512_p8, %p511_p5 }
 0x123   : > { %p514_p0 = pnand %p513_p11, %p507_p12 }
 0x125   : > { %517 = shalt.err (!%p514_p0)
}
 0x126   : > { %397 = dma.vmem_to_hbm [thread:$0]  (%p788_p9), %s729_s22, 256, %s727_s29, %s276_s15  }
 0x127 PF: > { %s304_s10 = sand.u32 1, %s552_s12   ;;  %p789_p7 = scmp.ne.s32.totalorder %s784_s27, 0 }
 0x128   : > { %p790_p13 = scmp.ge.s32.totalorder %s572_s17, 2  ;;  %s305_s19 = scalar_lea.sflag [#allocation4], %s304_s10 }
 0x12a   : > { %p404_p3 = pnand %p790_p13, %p789_p7 }
 0x12c   : > { %547 = dma.done.wait (!%p404_p3), %s305_s19, 256  }
 0x12d   : > { %549 = vsyncadd (!%p404_p3), %s305_s19, 4294967040  ;;  %s19_s17 = sadd.s32 1, %s572_s17   ;;  %s791_s12 = smov %s556_s13 }
 0x12e   : > { %p16_p6 = scmp.ge.s32.totalorder %s19_s17, 4   ;;  %s792_s13 = smov %s560_s14 }
 0x12f   : > { %s793_s14 = smov %s653_s26  ;;  %s794_s15 = smov %s568_s16 }
 0x130   : > { %s795_s16 = smov %s797_s20  ;;  %18 = sbr.rel (!%p16_p6) target bundleno = 6 (0x6), region = 77 }
 0x137   :  { %310 = vsyncpa [#allocation3], 1 }
 0x138   :  { %312 = vsyncpa [#allocation3 + $0x1], 1 }
 0x139   :  { %313 = vsyncpa [#allocation4], 1 }
 0x13a   :  { %315 = vsyncpa [#allocation4 + $0x1], 1 }

</bundles_post_ra>
